<compile_context>
chip_gen: v7x
topology: tpu7x:2x2x1
jax: 0.10.0
libtpu: 0.0.40
codegen_flags: <defaults>
</compile_context>

<pallas_src>
import math
import functools

import jax
import jax.numpy as jnp
from jax import lax
from jax.experimental import pallas as pl
from jax.experimental.pallas import tpu as pltpu


def _pick_tile(dim, target, step):
    """Largest multiple of `step` <= `target` that divides `dim`; else full dim.

    Keeps every BlockSpec either (8,128)-aligned or equal to the full array
    extent and avoids padded partial blocks on the reduction axis.
    """
    if dim <= target:
        return dim
    t = (target // step) * step
    while t >= step:
        if dim % t == 0:
            return t
        t -= step
    return dim


# ----------------------------------------------------------------------------
# Kernel 1: tiled linear projection  y = x @ W_t + b
#   x: (M, D_in), W_t: (D_in, D_out) (pre-transposed, bf16), b: (1, D_out) f32
# ----------------------------------------------------------------------------
def _linear_kernel(x_ref, w_ref, b_ref, o_ref, acc_ref, *, compute_dtype):
    k = pl.program_id(2)

    @pl.when(k == 0)
    def _init():
        acc_ref[...] = jnp.zeros_like(acc_ref)

    acc_ref[...] += jnp.dot(
        x_ref[...].astype(compute_dtype),
        w_ref[...].astype(compute_dtype),
        preferred_element_type=jnp.float32,
    )

    @pl.when(k == pl.num_programs(2) - 1)
    def _finalize():
        o_ref[...] = (acc_ref[...] + b_ref[...]).astype(o_ref.dtype)


def linear(x, w_t, b, *, out_dtype=jnp.bfloat16, compute_dtype=jnp.bfloat16,
           tm_target=512, tn_target=1024, tk_target=512):
    M, Din = x.shape
    Dout = w_t.shape[1]
    tm = _pick_tile(M, tm_target, 8)
    tn = _pick_tile(Dout, tn_target, 128)
    tk = _pick_tile(Din, tk_target, 128)
    grid = (M // tm, Dout // tn, Din // tk)

    return pl.pallas_call(
        functools.partial(_linear_kernel, compute_dtype=compute_dtype),
        out_shape=jax.ShapeDtypeStruct((M, Dout), out_dtype),
        grid_spec=pltpu.PrefetchScalarGridSpec(
            num_scalar_prefetch=0,
            grid=grid,
            in_specs=[
                pl.BlockSpec((tm, tk), lambda i, j, k: (i, k)),
                pl.BlockSpec((tk, tn), lambda i, j, k: (k, j)),
                pl.BlockSpec((1, tn), lambda i, j, k: (0, j)),
            ],
            out_specs=pl.BlockSpec((tm, tn), lambda i, j, k: (i, j)),
            scratch_shapes=[pltpu.VMEM((tm, tn), jnp.float32)],
        ),
        compiler_params=pltpu.CompilerParams(
            dimension_semantics=("parallel", "parallel", "arbitrary")
        ),
    )(x, w_t, b)


# ----------------------------------------------------------------------------
# Kernel 2: causal flash attention over (B, S, *) slabs.
#   grid = (B, q_tiles, kv_tiles); all heads processed per program.
#   Q/K/V may live at different lane-block offsets of the same (B, S, 3D) slab
#   (fused QKV projection) or be three separate (B, S, D) arrays.
# ----------------------------------------------------------------------------
def _mha_flash_kernel(q_ref, k_ref, v_ref, o_ref, m_ref, l_ref, acc_ref,
                      *, num_heads, d_k, tq, tkv, compute_dtype):
    j = pl.program_id(2)
    q_start = pl.program_id(1) * tq
    kv_start = j * tkv
    q_last = q_start + (tq - 1)
    kv_last = kv_start + (tkv - 1)

    @pl.when(j == 0)
    def _init():
        m_ref[...] = jnp.full_like(m_ref, -jnp.inf)
        l_ref[...] = jnp.zeros_like(l_ref)
        acc_ref[...] = jnp.zeros_like(acc_ref)

    def _process(causal_mask):
        q = q_ref[0]                     # (tq, D); 1/sqrt(d_k) folded into W_q
        k = k_ref[0]                     # (tkv, D)
        v = v_ref[0]                     # (tkv, D)
        for h in range(num_heads):       # static unroll over heads
            sl = slice(h * d_k, (h + 1) * d_k)
            qh = q[:, sl].astype(compute_dtype)
            kh = k[:, sl].astype(compute_dtype)
            vh = v[:, sl].astype(compute_dtype)

            # QK^T: contract last axes directly (no explicit k.T transpose).
            s = lax.dot_general(qh, kh, (((1,), (1,)), ((), ())),
                                preferred_element_type=jnp.float32)  # (tq,tkv)
            if causal_mask is not None:
                s = jnp.where(causal_mask, s, jnp.float32(-1e9))

            m_prev = m_ref[h]                                        # (tq, 1)
            m_new = jnp.maximum(m_prev, jnp.max(s, axis=-1, keepdims=True))
            alpha = jnp.exp(m_prev - m_new)
            p = jnp.exp(s - m_new)                                   # (tq,tkv)
            l_ref[h] = alpha * l_ref[h] + jnp.sum(p, axis=-1, keepdims=True)
            acc_ref[h] = alpha * acc_ref[h] + lax.dot_general(
                p.astype(compute_dtype), vh, (((1,), (0,)), ((), ())),
                preferred_element_type=jnp.float32)
            m_ref[h] = m_new

    # Interior tiles (entirely below the diagonal): no mask work at all.
    @pl.when(kv_last <= q_start)
    def _interior():
        _process(None)

    # Diagonal tiles: build the causal mask once, mask scores per head.
    @pl.when(jnp.logical_and(kv_start <= q_last, kv_last > q_start))
    def _diagonal():
        row = q_start + lax.broadcasted_iota(jnp.int32, (tq, tkv), 0)
        col = kv_start + lax.broadcasted_iota(jnp.int32, (tq, tkv), 1)
        _process(col <= row)
    # KV tiles strictly above the diagonal: neither branch runs (skipped), and
    # the index_map clamp below means they are not even DMA'd.

    @pl.when(j == pl.num_programs(2) - 1)
    def _finalize():
        outs = [acc_ref[h] * pl.reciprocal(l_ref[h], approx=True)
                for h in range(num_heads)]
        # One lane-dense (tq, d_model) store.
        o_ref[0] = jnp.concatenate(outs, axis=-1).astype(o_ref.dtype)


def mha_causal_attention(q_arr, k_arr, v_arr, *, num_heads, d_model,
                         lane_blocks=(0, 0, 0),
                         compute_dtype=jnp.bfloat16, out_dtype=jnp.bfloat16,
                         tq_target=256, tkv_target=256):
    B, S, _ = q_arr.shape
    D = d_model
    d_k = D // num_heads
    tq = _pick_tile(S, tq_target, 8)
    tkv = _pick_tile(S, tkv_target, 8)
    grid = (B, S // tq, S // tkv)
    qb, kb, vb = lane_blocks

    def kv_block(i, j):
        # Clamp to the last kv tile this q tile can causally attend to, so the
        # pipeline does not issue DMAs for tiles whose compute pl.when skips.
        return jnp.minimum(j, (i * tq + tq - 1) // tkv)

    q_spec = pl.BlockSpec((1, tq, D), lambda b, i, j: (b, i, qb))
    k_spec = pl.BlockSpec((1, tkv, D), lambda b, i, j: (b, kv_block(i, j), kb))
    v_spec = pl.BlockSpec((1, tkv, D), lambda b, i, j: (b, kv_block(i, j), vb))
    out_spec = pl.BlockSpec((1, tq, D), lambda b, i, j: (b, i, 0))

    return pl.pallas_call(
        functools.partial(
            _mha_flash_kernel, num_heads=num_heads, d_k=d_k,
            tq=tq, tkv=tkv, compute_dtype=compute_dtype),
        out_shape=jax.ShapeDtypeStruct((B, S, D), out_dtype),
        grid_spec=pltpu.PrefetchScalarGridSpec(
            num_scalar_prefetch=0,
            grid=grid,
            in_specs=[q_spec, k_spec, v_spec],
            out_specs=out_spec,
            scratch_shapes=[
                pltpu.VMEM((num_heads, tq, 1), jnp.float32),    # running max m
                pltpu.VMEM((num_heads, tq, 1), jnp.float32),    # running sum l
                pltpu.VMEM((num_heads, tq, d_k), jnp.float32),  # output acc
            ],
        ),
        compiler_params=pltpu.CompilerParams(
            dimension_semantics=("parallel", "parallel", "arbitrary")
        ),
    )(q_arr, k_arr, v_arr)


# ----------------------------------------------------------------------------
# Module-level forward (glue reshapes only in plain JAX; no head transposes).
# ----------------------------------------------------------------------------
class MultiHeadAttentionPallas:
    def __init__(self, d_model, num_heads, key, compute_dtype=jnp.bfloat16,
                 attn_tile=256):
        assert d_model % num_heads == 0
        self.d_model = d_model
        self.num_heads = num_heads
        self.d_k = d_model // num_heads
        self.compute_dtype = compute_dtype
        self.attn_tile = attn_tile

        # nn.Linear-style init: U(-1/sqrt(in), 1/sqrt(in)).
        # Weights are stored PRE-TRANSPOSED as (D_in, D_out) so no call-time w.T.
        bound = 1.0 / math.sqrt(d_model)
        keys = jax.random.split(key, 8)

        def init(kw, kb):
            w_t = jax.random.uniform(kw, (d_model, d_model), jnp.float32,
                                     -bound, bound)
            b = jax.random.uniform(kb, (1, d_model), jnp.float32, -bound, bound)
            return w_t, b

        # f32 master weights (used by the pure-JAX reference).
        self.Wq_t, self.bq = init(keys[0], keys[1])
        self.Wk_t, self.bk = init(keys[2], keys[3])
        self.Wv_t, self.bv = init(keys[4], keys[5])
        self.Wo_t, self.bo = init(keys[6], keys[7])

        # Kernel-side weights: bf16 in HBM; 1/sqrt(d_k) folded into W_q / b_q.
        cd = compute_dtype
        sm = 1.0 / math.sqrt(self.d_k)
        self.Wq_k = (self.Wq_t * sm).astype(cd)
        self.bq_k = self.bq * sm                  # biases stay f32 (tiny)
        self.Wk_k = self.Wk_t.astype(cd)
        self.bk_k = self.bk
        self.Wv_k = self.Wv_t.astype(cd)
        self.bv_k = self.bv
        self.Wo_k = self.Wo_t.astype(cd)
        self.bo_k = self.bo
        # Stacked (D, 3D) weight / (1, 3D) bias for the fused QKV projection.
        self.Wqkv_k = jnp.concatenate([self.Wq_k, self.Wk_k, self.Wv_k], axis=1)
        self.bqkv_k = jnp.concatenate([self.bq_k, self.bk_k, self.bv_k], axis=1)

    def __call__(self, Q, K, V):
        B, S, D = Q.shape
        M = B * S
        cd = self.compute_dtype

        # Fused path needs D % 128 == 0 so the attention BlockSpec can slice
        # D-wide lane blocks out of the (B, S, 3D) slab.
        fused = (Q is K) and (K is V) and (D % 128 == 0)
        if fused:
            qkv = linear(Q.reshape(M, D), self.Wqkv_k, self.bqkv_k,
                         out_dtype=cd, compute_dtype=cd).reshape(B, S, 3 * D)
            attn = mha_causal_attention(
                qkv, qkv, qkv, num_heads=self.num_heads, d_model=D,
                lane_blocks=(0, 1, 2), compute_dtype=cd, out_dtype=cd,
                tq_target=self.attn_tile, tkv_target=self.attn_tile)
        else:
            q = linear(Q.reshape(M, D), self.Wq_k, self.bq_k,
                       out_dtype=cd, compute_dtype=cd).reshape(B, S, D)
            k = linear(K.reshape(M, D), self.Wk_k, self.bk_k,
                       out_dtype=cd, compute_dtype=cd).reshape(B, S, D)
            v = linear(V.reshape(M, D), self.Wv_k, self.bv_k,
                       out_dtype=cd, compute_dtype=cd).reshape(B, S, D)
            attn = mha_causal_attention(
                q, k, v, num_heads=self.num_heads, d_model=D,
                lane_blocks=(0, 0, 0), compute_dtype=cd, out_dtype=cd,
                tq_target=self.attn_tile, tkv_target=self.attn_tile)

        # Final projection back to f32 to match the PyTorch module's output dtype.
        out = linear(attn.reshape(M, D), self.Wo_k, self.bo_k,
                     out_dtype=jnp.float32, compute_dtype=cd).reshape(B, S, D)
        return out


def _reference_forward(mha, Q, K, V):
    """Pure-JAX f32 reference matching the PyTorch module semantics."""
    B, S, D = Q.shape
    H, dk = mha.num_heads, mha.d_k

    def lin(x, w_t, b):
        return x @ w_t + b

    def split(x):
        return x.reshape(B, S, H, dk).transpose(0, 2, 1, 3)

    q = split(lin(Q, mha.Wq_t, mha.bq))
    k = split(lin(K, mha.Wk_t, mha.bk))
    v = split(lin(V, mha.Wv_t, mha.bv))

    scores = jnp.einsum("bhqd,bhkd->bhqk", q, k) / math.sqrt(dk)
    mask = jnp.tril(jnp.ones((S, S), jnp.float32))
    scores = jnp.where(mask < 0.1, jnp.float32(-1e9), scores)
    probs = jax.nn.softmax(scores, axis=-1)
    attn = jnp.einsum("bhqk,bhkd->bhqd", probs, v)
    combined = attn.transpose(0, 2, 1, 3).reshape(B, S, D)
    return lin(combined, mha.Wo_t, mha.bo)


if __name__ == "__main__":
    key = jax.random.PRNGKey(0)
    k_p1, k_q, k_k, k_v, k_p2, k_x = jax.random.split(key, 6)

    # Test 1: distinct Q/K/V inputs (non-fused path).  attn_tile=8 with S=16
    # exercises multiple kv tiles: interior unmasked tiles, diagonal masked
    # tiles, and DMA-clamped skipped tiles.
    B, S, d_model, num_heads = 2, 16, 32, 4
    mha = MultiHeadAttentionPallas(d_model, num_heads, k_p1, attn_tile=8)
    Q = jax.random.normal(k_q, (B, S, d_model), jnp.float32)
    K = jax.random.normal(k_k, (B, S, d_model), jnp.float32)
    V = jax.random.normal(k_v, (B, S, d_model), jnp.float32)
    out = mha(Q, K, V)
    jax.block_until_ready(out)
    ref = _reference_forward(mha, Q, K, V)
    assert out.shape == (B, S, d_model)
    err = float(jnp.max(jnp.abs(out - ref)))
    # bf16 weights/activations in HBM + bf16 MXU inputs (f32 accumulate) vs an
    # f32 reference: bf16-appropriate tolerance.
    assert err < 1e-1, f"max abs err (non-fused path) = {err}"

    # Test 2: self-attention with d_model % 128 == 0 -> fused QKV slab path.
    B2, S2, d_model2, num_heads2 = 2, 16, 128, 2
    mha2 = MultiHeadAttentionPallas(d_model2, num_heads2, k_p2, attn_tile=8)
    X = jax.random.normal(k_x, (B2, S2, d_model2), jnp.float32)
    out2 = mha2(X, X, X)
    jax.block_until_ready(out2)
    ref2 = _reference_forward(mha2, X, X, X)
    assert out2.shape == (B2, S2, d_model2)
    err2 = float(jnp.max(jnp.abs(out2 - ref2)))
    assert err2 < 2e-1, f"max abs err (fused path) = {err2}"

    print("KERNEL_OK")
</pallas_src>

<mosaic_0001>
module attributes {stable_mosaic.version = 11 : i64} {
  func.func @_linear_kernel(%arg0: i32, %arg1: i32, %arg2: i32, %arg3: memref<32x32xf32, #tpu.memory_space<vmem>>, %arg4: memref<32x32xbf16, #tpu.memory_space<vmem>>, %arg5: memref<1x32xf32, #tpu.memory_space<vmem>>, %arg6: memref<32x32xbf16, #tpu.memory_space<vmem>>, %arg7: memref<32x32xf32, #tpu.memory_space<vmem>>) attributes {dimension_semantics = [#tpu.dimension_semantics<parallel>, #tpu.dimension_semantics<parallel>, #tpu.dimension_semantics<arbitrary>], iteration_bounds = array<i64: 1, 1, 1>, scalar_prefetch = 0 : i64, scratch_operands = 1 : i64, tpu.core_type = #tpu.core_type<tc>, window_params = [{transform_indices = @transform_0, window_bounds = array<i64: 32, 32>}, {transform_indices = @transform_1, window_bounds = array<i64: 32, 32>}, {transform_indices = @transform_2, window_bounds = array<i64: 1, 32>}, {transform_indices = @transform_3, window_bounds = array<i64: 32, 32>}]} {
    %c0_i32 = arith.constant 0 : i32
    %0 = arith.cmpi eq, %arg2, %c0_i32 : i32
    %1 = arith.extui %0 : i1 to i32
    %c0_i32_0 = arith.constant 0 : i32
    %2 = arith.cmpi ne, %1, %c0_i32_0 : i32
    scf.if %2 {
      %cst_10 = arith.constant 0.000000e+00 : f32
      %13 = vector.broadcast %cst_10 : f32 to vector<32x32xf32>
      %c0_11 = arith.constant 0 : index
      %c0_12 = arith.constant 0 : index
      %14 = vector.load %arg7[%c0_11, %c0_12] : memref<32x32xf32, #tpu.memory_space<vmem>>, vector<32x32xf32>
      tpu.vector_store %arg7[%c0_11, %c0_12], %13 {strides = array<i32>} : memref<32x32xf32, #tpu.memory_space<vmem>>, vector<32x32xf32>,
    } else {
    }
    %c0 = arith.constant 0 : index
    %c0_1 = arith.constant 0 : index
    %3 = vector.load %arg7[%c0, %c0_1] : memref<32x32xf32, #tpu.memory_space<vmem>>, vector<32x32xf32>
    %c0_2 = arith.constant 0 : index
    %c0_3 = arith.constant 0 : index
    %4 = vector.load %arg3[%c0_2, %c0_3] : memref<32x32xf32, #tpu.memory_space<vmem>>, vector<32x32xf32>
    %5 = arith.truncf %4 : vector<32x32xf32> to vector<32x32xbf16>
    %c0_4 = arith.constant 0 : index
    %c0_5 = arith.constant 0 : index
    %6 = vector.load %arg4[%c0_4, %c0_5] : memref<32x32xbf16, #tpu.memory_space<vmem>>, vector<32x32xbf16>
    %cst = arith.constant dense<0.000000e+00> : vector<32x32xf32>
    %7 = tpu.matmul %5, %6, %cst {dimension_numbers = #tpu.dot_dimension_numbers<[1], [0], [0], [1], [0, 0, 1, 1], [], []>} : vector<32x32xbf16>, vector<32x32xbf16>, vector<32x32xf32> -> vector<32x32xf32>
    %8 = arith.addf %3, %7 : vector<32x32xf32>
    %c0_6 = arith.constant 0 : index
    %c0_7 = arith.constant 0 : index
    %9 = vector.load %arg7[%c0_6, %c0_7] : memref<32x32xf32, #tpu.memory_space<vmem>>, vector<32x32xf32>
    tpu.vector_store %arg7[%c0_6, %c0_7], %8 {strides = array<i32>} : memref<32x32xf32, #tpu.memory_space<vmem>>, vector<32x32xf32>,
    %c0_i32_8 = arith.constant 0 : i32
    %10 = arith.cmpi eq, %arg2, %c0_i32_8 : i32
    %11 = arith.extui %10 : i1 to i32
    %c0_i32_9 = arith.constant 0 : i32
    %12 = arith.cmpi ne, %11, %c0_i32_9 : i32
    scf.if %12 {
      %c0_10 = arith.constant 0 : index
      %c0_11 = arith.constant 0 : index
      %13 = vector.load %arg7[%c0_10, %c0_11] : memref<32x32xf32, #tpu.memory_space<vmem>>, vector<32x32xf32>
      %c0_12 = arith.constant 0 : index
      %c0_13 = arith.constant 0 : index
      %14 = vector.load %arg5[%c0_12, %c0_13] : memref<1x32xf32, #tpu.memory_space<vmem>>, vector<1x32xf32>
      %15 = vector.broadcast %14 : vector<1x32xf32> to vector<32x32xf32>
      %16 = arith.addf %13, %15 : vector<32x32xf32>
      %17 = arith.truncf %16 : vector<32x32xf32> to vector<32x32xbf16>
      %c0_14 = arith.constant 0 : index
      %c0_15 = arith.constant 0 : index
      %18 = vector.load %arg6[%c0_14, %c0_15] : memref<32x32xbf16, #tpu.memory_space<vmem>>, vector<32x32xbf16>
      tpu.vector_store %arg6[%c0_14, %c0_15], %17 {strides = array<i32>} : memref<32x32xbf16, #tpu.memory_space<vmem>>, vector<32x32xbf16>,
    } else {
    }
    return
  }
  func.func @transform_0(%arg0: i32, %arg1: i32, %arg2: i32) -> (i32, i32) {
    %c0_i32 = arith.constant 0 : i32
    return %arg0, %arg2 : i32, i32
  }
  func.func @transform_1(%arg0: i32, %arg1: i32, %arg2: i32) -> (i32, i32) {
    %c0_i32 = arith.constant 0 : i32
    return %arg2, %arg1 : i32, i32
  }
  func.func @transform_2(%arg0: i32, %arg1: i32, %arg2: i32) -> (i32, i32) {
    %c0_i32 = arith.constant 0 : i32
    %c0_i32_0 = arith.constant 0 : i32
    return %c0_i32, %arg1 : i32, i32
  }
  func.func @transform_3(%arg0: i32, %arg1: i32, %arg2: i32) -> (i32, i32) {
    %c0_i32 = arith.constant 0 : i32
    return %arg0, %arg1 : i32, i32
  }
}

</mosaic_0001>

<bundles_post_ra>
// kernel: tpu_custom_call.1
= control target key start
LH: loop header
LB: loop body
LE: loop exit
PB: predicated region body
PF: predicated region fallthrough
CT: control target
= control target key end

     0   :  { %8 = vsyncpa [#allocation4], 0  ;;  %s390_s0 = inlined_call_operand.hbm [shape: f32[32,32], index: 0, kind: input, shape index: {}]   ;;  %s391_s1 = inlined_call_operand.hbm [shape: bf16[32,32], index: 1, kind: input, shape index: {}]   ;;  %s392_s2 = inlined_call_operand.vmem [shape: f32[1,32], index: 2, kind: input, shape index: {}]   ;;  %s393_s3 = inlined_call_operand.hbm [shape: bf16[32,32], index: 3, kind: output, shape index: {}]  }
   0x1   :  { %9 = vsyncpa [#allocation7], 0 }
   0x2   :  { %10 = vsyncpa [#allocation5], 0  ;;  %s307_s12 = smov [#allocation3]   ;;  %s235_s16 = scalar_lea.hbm %s390_s0, 512 }
   0x3   :  { %s16_s13 = sshll.u32 %s307_s12, 4  ;;  %p236_p0 = scmp.ne.s32.totalorder %s390_s0, %s235_s16  ;;  %s17_s13 = int_to_ptr.vmem [resolvable:$true] %s16_s13 }
   0x4   :  { %p239_p1 = scmp.lt.u32.totalorder %s235_s16, %s390_s0 }
   0x6   :  { %p241_p2 = pnand %p239_p1, %p236_p0 }
   0x8   :  { %244 = shalt.err (!%p241_p2)
}
   0x9   :  { %s245_s21 = scalar_lea.vmem %s17_s13, 512  ;;  %p250_p4 = scmp.lt.s32.totalorder %s17_s13, %s17_s13 }
   0xa   :  { %p246_p3 = scmp.ne.s32.totalorder %s17_s13, %s245_s21  ;;  %p251_p5 = scmp.lt.s32.totalorder %s245_s21, %s245_s21 }
   0xc   :  { %p252_p6 = por %p251_p5, %p250_p4 }
   0xe   :  { %p253_p7 = pnand %p252_p6, %p246_p3 }
  0x10   :  { %256 = shalt.err (!%p253_p7)
}
  0x11   :  { %s308_s22 = smov 128   ;;  %s309_s23 = smov 8  }
  0x12   :  { %22 = dma.hbm_to_vmem [thread:$0]  %s390_s0, 512, %s17_s13, [#allocation4], %s308_s22, %s308_s22, %s309_s23  }
  0x13   :  { %s310_s26 = smov [#allocation6]   ;;  %s257_s30 = scalar_lea.hbm %s391_s1, 256 }
  0x14   :  { %s28_s27 = sshll.u32 %s310_s26, 4  ;;  %p258_p8 = scmp.ne.s32.totalorder %s391_s1, %s257_s30  ;;  %s29_s27 = int_to_ptr.vmem [resolvable:$true] %s28_s27 }
  0x15   :  { %p261_p9 = scmp.lt.u32.totalorder %s257_s30, %s391_s1 }
  0x17   :  { %p263_p10 = pnand %p261_p9, %p258_p8 }
  0x19   :  { %266 = shalt.err (!%p263_p10)
}
  0x1a   :  { %s267_s8 = scalar_lea.vmem %s29_s27, 256  ;;  %p272_p12 = scmp.lt.s32.totalorder %s29_s27, %s29_s27 }
  0x1b   :  { %p268_p11 = scmp.ne.s32.totalorder %s29_s27, %s267_s8  ;;  %p273_p13 = scmp.lt.s32.totalorder %s267_s8, %s267_s8 }
  0x1d   :  { %p274_p0 = por %p273_p13, %p272_p12 }
  0x1f   :  { %p275_p1 = pnand %p274_p0, %p268_p11 }
  0x21   :  { %278 = shalt.err (!%p275_p1)
}
  0x22   :  { %s311_s0 = smov 64   ;;  %s312_s9 = smov 4  }
  0x23   :  { %34 = dma.hbm_to_vmem [thread:$0]  %s391_s1, 256, %s29_s27, [#allocation7], %s311_s0, %s311_s0, %s312_s9  }
  0x24   :  { %301 = dma.done.wait [#allocation4], 512  }
  0x25   :  { %302 = vsyncadd [#allocation4], 4294966784 }
  0x26   :  { %303 = dma.done.wait [#allocation7], 256  }
  0x27   :  { %304 = vsyncadd [#allocation7], 4294967040  ;;  %vm48_vm0 = vcmask 261120   ;;  %v313_v0 = vmov 0.0   ;;  %v233_v1 = vld [vmem:[#allocation6] sm:$0xff]   ;;  %v234_v2 = vld [vmem:[#allocation6 + $0x8] sm:$0xff]  }
  0x28   :  { %51 = vst.msk [vmem:[#allocation2 + $0x10] sm:$0xff] %vm48_vm0, %v313_v0  ;;  %49 = vst.msk [vmem:[#allocation2] sm:$0xff] %vm48_vm0, %v313_v0  ;;  %217 = vmatprep.subr.bf16.mxu0 %v233_v1  ;;  %v57_v3 = vld [vmem:[#allocation3] sm:$0xff]  ;;  %v58_v4 = vld [vmem:[#allocation3 + $0x8] sm:$0xff]  ;;  %vm177_vm1 = vcmask 257024   ;;  %s314_s13 = smov [#allocation8]  }
  0x29   :  { %50 = vst.msk [vmem:[#allocation2 + $0x8] sm:$0xff] %vm48_vm0, %v313_v0  ;;  %52 = vst.msk [vmem:[#allocation2 + $0x18] sm:$0xff] %vm48_vm0, %v313_v0  ;;  %218 = vmatpush3.bf16.msra.mxu0 %v233_v1  ;;  %v61_v5 = vpack.c.bf16 %v58_v4, %v57_v3  ;;  %v59_v6 = vld [vmem:[#allocation3 + $0x10] sm:$0xff]  ;;  %v60_v7 = vld [vmem:[#allocation3 + $0x18] sm:$0xff]  ;;  %s187_s14 = sshll.u32 %s314_s13, 4  ;;  %s188_s14 = int_to_ptr.vmem [resolvable:$true] %s187_s14 }
  0x2a   :  { %219 = vmatprep.subr.bf16.mxu0 %v234_v2  ;;  %v62_v8 = vpack.c.bf16 %v60_v7, %v59_v6  ;;  %v204_v21 = vld [vmem:[%s392_s2] ss:$0 sm:$0xff]  ;;  %s279_s2 = scalar_lea.vmem %s188_s14, 256  ;;  %p284_p3 = scmp.lt.s32.totalorder %s188_s14, %s188_s14 }
  0x2b   :  { %221 = vmatprep.mubr.msk.bf16.mxu0 %vm48_vm0, %v61_v5  ;;  %p280_p2 = scmp.ne.s32.totalorder %s188_s14, %s279_s2  ;;  %p285_p4 = scmp.lt.s32.totalorder %s279_s2, %s279_s2 }
  0x2d   :  { %220 = vmatpush3.bf16.msra.mxu0 %v234_v2  ;;  %p286_p5 = por %p285_p4, %p284_p3 }
  0x2f   :  { %v55_v9 = vld [vmem:[#allocation2 + $0x10] sm:$0xff]  ;;  %v53_v10 = vld [vmem:[#allocation2] sm:$0xff]  ;;  %p287_p6 = pnand %p286_p5, %p280_p2 }
  0x30   :  { %222 = vmatmul.mubr.msk.bf16.vlgmr.msra.gmra.mrb[0].mxu0 %vm48_vm0, %v62_v8  ;;  %v56_v12 = vld [vmem:[#allocation2 + $0x18] sm:$0xff]  ;;  %v54_v15 = vld [vmem:[#allocation2 + $0x8] sm:$0xff] }
 0x103   :  { %v223_v11 = vpop.f32.mrb[0].mxu0 }
 0x104   :  { %v137_v13 = vadd.f32 %v223_v11, %v55_v9  ;;  %v120_v14 = vpop.f32.mrb[1].mxu0 }
 0x105   :  { %v135_v16 = vadd.f32 %v120_v14, %v53_v10  ;;  %v224_v17 = vpop.f32.mrb[2].mxu0 }
 0x106   :  { %141 = vst.msk [vmem:[#allocation2 + $0x10] sm:$0xff] %vm48_vm0, %v137_v13  ;;  %v138_v18 = vadd.f32 %v224_v17, %v56_v12  ;;  %v123_v19 = vpop.f32.mrb[3].mxu0 }
 0x107   :  { %139 = vst.msk [vmem:[#allocation2] sm:$0xff] %vm48_vm0, %v135_v16  ;;  %v136_v20 = vadd.f32 %v123_v19, %v54_v15 }
 0x108   :  { %142 = vst.msk [vmem:[#allocation2 + $0x18] sm:$0xff] %vm48_vm0, %v138_v18 }
 0x109   :  { %140 = vst.msk [vmem:[#allocation2 + $0x8] sm:$0xff] %vm48_vm0, %v136_v20 }
 0x10d   :  { %v148_v22 = vld [vmem:[#allocation2 + $0x10] sm:$0xff] }
 0x10e   :  { %v146_v23 = vld [vmem:[#allocation2] sm:$0xff]  ;;  %v159_v24 = vadd.f32 %v204_v21, %v148_v22 }
 0x10f   :  { %v149_v25 = vld [vmem:[#allocation2 + $0x18] sm:$0xff]  ;;  %v157_v26 = vadd.f32 %v204_v21, %v146_v23 }
 0x110   :  { %v147_v27 = vld [vmem:[#allocation2 + $0x8] sm:$0xff]  ;;  %v160_v28 = vadd.f32 %v204_v21, %v149_v25  ;;  %v211_v29 = vpack.c.bf16 %v159_v24, %v159_v24 }
 0x111   :  { %v158_v30 = vadd.f32 %v204_v21, %v147_v27  ;;  %v209_v31 = vpack.c.bf16 %v157_v26, %v157_v26 }
 0x112   :  { %v212_v32 = vpack.c.bf16 %v160_v28, %v160_v28  ;;  %180 = vst.msk [vmem:[#allocation8 + $0x8] sm:$0xf] %vm177_vm1, %v211_v29 }
 0x113   :  { %v210_v33 = vpack.c.bf16 %v158_v30, %v158_v30  ;;  %178 = vst.msk [vmem:[#allocation8] sm:$0xf] %vm177_vm1, %v209_v31 }
 0x114   :  { %181 = vst.msk [vmem:[#allocation8 + $0xc] sm:$0xf] %vm177_vm1, %v212_v32 }
 0x115   :  { %179 = vst.msk [vmem:[#allocation8 + $0x4] sm:$0xf] %vm177_vm1, %v210_v33 }
 0x116   :  { %290 = shalt.err (!%p287_p6)
}
 0x117   :  { %s291_s17 = scalar_lea.hbm %s393_s3, 256 }
 0x118   :  { %p292_p7 = scmp.ne.s32.totalorder %s393_s3, %s291_s17  ;;  %p295_p8 = scmp.lt.u32.totalorder %s291_s17, %s393_s3 }
 0x11a   :  { %p297_p9 = pnand %p295_p8, %p292_p7 }
 0x11c   :  { %300 = shalt.err (!%p297_p9)
}
 0x11d   :  { %193 = dma.vmem_to_hbm [thread:$0]  %s188_s14, 256, %s393_s3, [#allocation5], %s311_s0, %s311_s0, %s312_s9  }
 0x11e   :  { %305 = dma.done.wait [#allocation5], 256  }
 0x11f   :  { %306 = vsyncadd [#allocation5], 4294967040 }
 0x120   :  { %197 = vsyncpa [#allocation4], 1 }
 0x121   :  { %198 = vsyncpa [#allocation7], 1 }
 0x122   :  { %199 = vsyncpa [#allocation5], 1 }

</bundles_post_ra>
